<compile_context>
chip_gen: v6e
topology: v6e:2x2x1
jax: 0.10.0
libtpu: 0.0.40
codegen_flags: <defaults>
</compile_context>

<pallas_src>
import jax
import jax.numpy as jnp
from jax.experimental import pallas as pl
from jax.experimental.pallas import tpu as pltpu


def _make_divisible(v, divisor, min_value=None):
    if min_value is None:
        min_value = divisor
    new_v = max(min_value, int(v + divisor / 2) // divisor * divisor)
    if new_v < 0.9 * v:
        new_v += divisor
    return new_v


def _silu(v):
    return v * jax.nn.sigmoid(v)


# ----------------------------- Pallas kernel ------------------------------- #
def mbconv_kernel(x_ref, w1_ref, b1_ref, wd0_ref, wd1_ref, wd2_ref, b2_ref,
                  wf1_ref, bf1_ref, wf2_ref, bf2_ref, w3_ref, b3_ref, o_ref):
    """One grid step = one batch sample. x_ref is (C_in, L)."""
    bf16 = jnp.bfloat16
    x = x_ref[...]                                               # (C_in, L) f32

    # --- expand 1x1 conv (BN scale pre-folded, bf16 weights) + bias + SiLU ---
    h = jnp.dot(w1_ref[...], x.astype(bf16),
                preferred_element_type=jnp.float32) + b1_ref[...]
    h = _silu(h)                                                 # (H, L) f32

    # --- depthwise conv k=3, stride=1, pad=1 ---
    # Boundary masks are pre-folded into the edge-tap weights host-side, so
    # the jnp.roll wrap-around columns are multiplied by zero.  Accumulating
    # tap-by-tap keeps the shifted copies of h short-lived.
    d = wd1_ref[...] * h + b2_ref[...]
    d = d + wd0_ref[...] * jnp.roll(h, 1, axis=1)
    d = d + wd2_ref[...] * jnp.roll(h, -1, axis=1)
    d = _silu(d)                                                 # (H, L) f32

    # --- squeeze / excite (per-sample): lane mean -> tiny bf16 dots -> gate ---
    pooled = jnp.mean(d, axis=1, keepdims=True)                  # (H, 1)
    z = _silu(jnp.dot(wf1_ref[...], pooled.astype(bf16),
                      preferred_element_type=jnp.float32) + bf1_ref[...])   # (SQ,1)
    g = jax.nn.sigmoid(jnp.dot(wf2_ref[...], z.astype(bf16),
                               preferred_element_type=jnp.float32)
                       + bf2_ref[...])                           # (H, 1)
    d = d * g                                                    # lane broadcast

    # --- project 1x1 (BN scale pre-folded, bf16 weights) + bias + residual ---
    out = jnp.dot(w3_ref[...], d.astype(bf16),
                  preferred_element_type=jnp.float32) + b3_ref[...]
    o_ref[...] = (out + x).astype(o_ref.dtype)


# ------------------------------ wrapper ------------------------------------ #
def mbconv_pallas(x, params):
    (w1, s1, b1, wd, s2, b2, wf1, bf1, wf2, bf2, w3, s3, b3) = params
    B, C_in, L = x.shape
    H = w1.shape[0]
    SQ = wf1.shape[0]
    C_out = w3.shape[0]

    f32, bf16 = jnp.float32, jnp.bfloat16

    # Fold the (inference-mode) BatchNorm scales into the conv weights and
    # quantize the matmul/tap weights to bf16 (single-pass MXU, half the
    # constant DMA bytes).  Biases stay f32 (added on the f32 VPU chain).
    w1f = (s1 * w1).astype(bf16)                     # (H, C_in)
    wdf = s2 * wd                                    # (H, 3) f32, masked below
    w3f = (s3 * w3).astype(bf16)                     # (C_out, H)

    # Depthwise boundary handling: fold the 0/1 "not-first/not-last" masks
    # into the edge-tap weights host-side (hoisted, loop-invariant constants).
    pos = jnp.arange(L)
    nf = (pos != 0).astype(f32)[None, :]             # (1, L)
    nl = (pos != L - 1).astype(f32)[None, :]         # (1, L)
    wd0m = (wdf[:, 0:1] * nf).astype(bf16)           # (H, L) left tap, masked
    wd1c = wdf[:, 1:2].astype(bf16)                  # (H, 1) center tap
    wd2m = (wdf[:, 2:3] * nl).astype(bf16)           # (H, L) right tap, masked

    consts = (w1f, b1.astype(f32), wd0m, wd1c, wd2m, b2.astype(f32),
              wf1.astype(bf16), bf1.astype(f32), wf2.astype(bf16),
              bf2.astype(f32), w3f, b3.astype(f32))

    # Advisory cost hint for XLA scheduling around this tiny custom call.
    flops = int(2 * B * L * H * (C_in + 3 + C_out) + 4 * B * H * SQ)
    transcendentals = int(B * L * 2 * H + B * (SQ + H))
    bytes_accessed = int((x.size + B * C_out * L) * 4
                         + sum(int(a.size) * a.dtype.itemsize for a in consts))
    cost = pl.CostEstimate(flops=flops, transcendentals=transcendentals,
                           bytes_accessed=bytes_accessed)

    # Grid over the batch: the block's None ("squeezed") batch dim feeds the
    # kernel a 2-D (C, L) tile directly -- no transpose/reshape HBM passes.
    # With B >= 2 "parallel" steps, both v7x TensorCores get work and the
    # per-step x DMA overlaps compute on v5e/v6e.  Per-step lanes = L, which is
    # >= 128 here (lane-dense, unmasked stores); at realistic sequence lengths
    # it comfortably exceeds the ~512-lane guidance.
    out = pl.pallas_call(
        mbconv_kernel,
        out_shape=jax.ShapeDtypeStruct((B, C_out, L), x.dtype),
        grid=(B,),
        in_specs=[pl.BlockSpec((None, C_in, L), lambda b: (b, 0, 0))]
                 + [pl.BlockSpec(a.shape, lambda b: (0, 0)) for a in consts],
        out_specs=pl.BlockSpec((None, C_out, L), lambda b: (b, 0, 0)),
        compiler_params=pltpu.CompilerParams(
            dimension_semantics=("parallel",)),
        cost_estimate=cost,
        # TODO(synk): when this block is chained inside the full BasicLayer
        # (C_in == C_out, same dtype, x not needed afterwards), add
        # input_output_aliases={0: 0} to reuse x's HBM buffer.
    )(x, *consts)
    return out


# --------------------------- pure-JAX reference ----------------------------- #
def mbconv_reference(x, params):
    (w1, s1, b1, wd, s2, b2, wf1, bf1, wf2, bf2, w3, s3, b3) = params
    h = jnp.einsum('hc,bcl->bhl', w1, x)
    h = _silu(h * s1[None] + b1[None])
    hp = jnp.pad(h, ((0, 0), (0, 0), (1, 1)))
    d = (wd[None, :, 0:1] * hp[:, :, :-2]
         + wd[None, :, 1:2] * hp[:, :, 1:-1]
         + wd[None, :, 2:3] * hp[:, :, 2:])
    d = _silu(d * s2[None] + b2[None])
    pooled = jnp.mean(d, axis=2)                                   # (B, H)
    z = _silu(pooled @ wf1.T + bf1[:, 0])
    gate = jax.nn.sigmoid(z @ wf2.T + bf2[:, 0])
    d = d * gate[:, :, None]
    out = jnp.einsum('oh,bhl->bol', w3, d)
    out = out * s3[None] + b3[None]
    return out + x


# ------------------------------- main --------------------------------------- #
def _bn_fold(key, n, eps=1e-5):
    k1, k2, k3, k4 = jax.random.split(key, 4)
    gamma = 1.0 + 0.1 * jax.random.normal(k1, (n,), jnp.float32)
    beta = 0.1 * jax.random.normal(k2, (n,), jnp.float32)
    mean = 0.1 * jax.random.normal(k3, (n,), jnp.float32)
    var = jnp.abs(jax.random.normal(k4, (n,), jnp.float32)) + 0.5
    scale = gamma / jnp.sqrt(var + eps)
    bias = beta - mean * scale
    return scale.reshape(n, 1), bias.reshape(n, 1)


if __name__ == "__main__":
    B, C_IN, C_OUT, L = 2, 8, 8, 128
    EXPAND = 4
    H = round(C_IN * EXPAND)                        # hidden_dim = 32
    SQ = _make_divisible(C_IN // 4, 8)              # SE squeeze dim = 8

    key = jax.random.PRNGKey(0)
    ks = jax.random.split(key, 12)

    x = jax.random.normal(ks[0], (B, C_IN, L), jnp.float32)

    # conv weights (Conv1d kernels with k=1 / depthwise k=3, bias=False)
    w1 = 0.2 * jax.random.normal(ks[1], (H, C_IN), jnp.float32)      # expand 1x1
    wd = 0.2 * jax.random.normal(ks[2], (H, 3), jnp.float32)         # depthwise k=3
    w3 = 0.2 * jax.random.normal(ks[3], (C_OUT, H), jnp.float32)     # project 1x1

    # folded BatchNorm (inference mode) -> per-channel scale / bias
    s1, b1 = _bn_fold(ks[4], H)
    s2, b2 = _bn_fold(ks[5], H)
    s3, b3 = _bn_fold(ks[6], C_OUT)

    # SE layer linear weights / biases
    wf1 = 0.2 * jax.random.normal(ks[7], (SQ, H), jnp.float32)
    bf1 = 0.1 * jax.random.normal(ks[8], (SQ, 1), jnp.float32)
    wf2 = 0.2 * jax.random.normal(ks[9], (H, SQ), jnp.float32)
    bf2 = 0.1 * jax.random.normal(ks[10], (H, 1), jnp.float32)

    params = (w1, s1, b1, wd, s2, b2, wf1, bf1, wf2, bf2, w3, s3, b3)

    out = jax.block_until_ready(mbconv_pallas(x, params))
    ref = jax.block_until_ready(mbconv_reference(x, params))

    assert out.shape == (B, C_OUT, L)
    # Tolerance covers bf16 MXU operands in the kernel (per perf review) vs.
    # the f32 / XLA-default-precision reference einsums.
    assert jnp.allclose(out, ref, rtol=2e-2, atol=3e-2), "mismatch vs reference"

    print("KERNEL_OK")
</pallas_src>

<mosaic_0001>
module attributes {stable_mosaic.version = 11 : i64} {
  func.func @mbconv_kernel(%arg0: i32, %arg1: memref<1x8x128xf32, #tpu.memory_space<vmem>>, %arg2: memref<32x8xbf16, #tpu.memory_space<vmem>>, %arg3: memref<32x1xf32, #tpu.memory_space<vmem>>, %arg4: memref<32x128xbf16, #tpu.memory_space<vmem>>, %arg5: memref<32x1xbf16, #tpu.memory_space<vmem>>, %arg6: memref<32x128xbf16, #tpu.memory_space<vmem>>, %arg7: memref<32x1xf32, #tpu.memory_space<vmem>>, %arg8: memref<8x32xbf16, #tpu.memory_space<vmem>>, %arg9: memref<8x1xf32, #tpu.memory_space<vmem>>, %arg10: memref<32x8xbf16, #tpu.memory_space<vmem>>, %arg11: memref<32x1xf32, #tpu.memory_space<vmem>>, %arg12: memref<8x32xbf16, #tpu.memory_space<vmem>>, %arg13: memref<8x1xf32, #tpu.memory_space<vmem>>, %arg14: memref<1x8x128xf32, #tpu.memory_space<vmem>>) attributes {dimension_semantics = [#tpu.dimension_semantics<parallel>], iteration_bounds = array<i64: 2>, scalar_prefetch = 0 : i64, scratch_operands = 0 : i64, tpu.core_type = #tpu.core_type<tc>, window_params = [{transform_indices = @transform_0, window_bounds = array<i64: 1, 8, 128>}, {pipeline_mode = #tpu.pipeline_mode<synchronous>, transform_indices = @transform_1, window_bounds = array<i64: 32, 8>}, {pipeline_mode = #tpu.pipeline_mode<synchronous>, transform_indices = @transform_2, window_bounds = array<i64: 32, 1>}, {pipeline_mode = #tpu.pipeline_mode<synchronous>, transform_indices = @transform_3, window_bounds = array<i64: 32, 128>}, {pipeline_mode = #tpu.pipeline_mode<synchronous>, transform_indices = @transform_4, window_bounds = array<i64: 32, 1>}, {pipeline_mode = #tpu.pipeline_mode<synchronous>, transform_indices = @transform_5, window_bounds = array<i64: 32, 128>}, {pipeline_mode = #tpu.pipeline_mode<synchronous>, transform_indices = @transform_6, window_bounds = array<i64: 32, 1>}, {pipeline_mode = #tpu.pipeline_mode<synchronous>, transform_indices = @transform_7, window_bounds = array<i64: 8, 32>}, {pipeline_mode = #tpu.pipeline_mode<synchronous>, transform_indices = @transform_8, window_bounds = array<i64: 8, 1>}, {pipeline_mode = #tpu.pipeline_mode<synchronous>, transform_indices = @transform_9, window_bounds = array<i64: 32, 8>}, {pipeline_mode = #tpu.pipeline_mode<synchronous>, transform_indices = @transform_10, window_bounds = array<i64: 32, 1>}, {pipeline_mode = #tpu.pipeline_mode<synchronous>, transform_indices = @transform_11, window_bounds = array<i64: 8, 32>}, {pipeline_mode = #tpu.pipeline_mode<synchronous>, transform_indices = @transform_12, window_bounds = array<i64: 8, 1>}, {transform_indices = @transform_13, window_bounds = array<i64: 1, 8, 128>}]} {
    %c0 = arith.constant 0 : index
    %c0_0 = arith.constant 0 : index
    %c0_1 = arith.constant 0 : index
    %0 = vector.load %arg1[%c0, %c0_0, %c0_1] : memref<1x8x128xf32, #tpu.memory_space<vmem>>, vector<1x8x128xf32>
    %1 = vector.shape_cast %0 : vector<1x8x128xf32> to vector<8x128xf32>
    %c0_2 = arith.constant 0 : index
    %c0_3 = arith.constant 0 : index
    %2 = vector.load %arg2[%c0_2, %c0_3] : memref<32x8xbf16, #tpu.memory_space<vmem>>, vector<32x8xbf16>
    %3 = arith.truncf %1 : vector<8x128xf32> to vector<8x128xbf16>
    %cst = arith.constant dense<0.000000e+00> : vector<32x128xf32>
    %4 = tpu.matmul %2, %3, %cst {dimension_numbers = #tpu.dot_dimension_numbers<[1], [0], [0], [1], [0, 0, 1, 1], [], []>} : vector<32x8xbf16>, vector<8x128xbf16>, vector<32x128xf32> -> vector<32x128xf32>
    %c0_4 = arith.constant 0 : index
    %c0_5 = arith.constant 0 : index
    %5 = vector.load %arg3[%c0_4, %c0_5] : memref<32x1xf32, #tpu.memory_space<vmem>>, vector<32x1xf32>
    %6 = vector.broadcast %5 : vector<32x1xf32> to vector<32x128xf32>
    %7 = arith.addf %4, %6 : vector<32x128xf32>
    %8 = arith.negf %7 : vector<32x128xf32>
    %9 = math.exp %8 : vector<32x128xf32>
    %cst_6 = arith.constant 1.000000e+00 : f32
    %10 = vector.broadcast %cst_6 : f32 to vector<32x128xf32>
    %11 = arith.addf %10, %9 : vector<32x128xf32>
    %12 = arith.divf %10, %11 : vector<32x128xf32>
    %13 = arith.mulf %7, %12 : vector<32x128xf32>
    %c0_7 = arith.constant 0 : index
    %c0_8 = arith.constant 0 : index
    %14 = vector.load %arg5[%c0_7, %c0_8] : memref<32x1xbf16, #tpu.memory_space<vmem>>, vector<32x1xbf16>
    %15 = arith.extf %14 : vector<32x1xbf16> to vector<32x1xf32>
    %16 = vector.broadcast %15 : vector<32x1xf32> to vector<32x128xf32>
    %17 = arith.mulf %16, %13 : vector<32x128xf32>
    %c0_9 = arith.constant 0 : index
    %c0_10 = arith.constant 0 : index
    %18 = vector.load %arg7[%c0_9, %c0_10] : memref<32x1xf32, #tpu.memory_space<vmem>>, vector<32x1xf32>
    %19 = vector.broadcast %18 : vector<32x1xf32> to vector<32x128xf32>
    %20 = arith.addf %17, %19 : vector<32x128xf32>
    %c0_11 = arith.constant 0 : index
    %c0_12 = arith.constant 0 : index
    %21 = vector.load %arg4[%c0_11, %c0_12] : memref<32x128xbf16, #tpu.memory_space<vmem>>, vector<32x128xbf16>
    %22 = vector.extract_strided_slice %13 {offsets = [0, 127], sizes = [32, 1], strides = [1, 1]} : vector<32x128xf32> to vector<32x1xf32>
    %23 = vector.extract_strided_slice %13 {offsets = [0, 0], sizes = [32, 127], strides = [1, 1]} : vector<32x128xf32> to vector<32x127xf32>
    %24 = tpu.concatenate %22, %23 in 1 : vector<32x1xf32>, vector<32x127xf32> -> vector<32x128xf32>
    %25 = arith.extf %21 : vector<32x128xbf16> to vector<32x128xf32>
    %26 = arith.mulf %25, %24 : vector<32x128xf32>
    %27 = arith.addf %20, %26 : vector<32x128xf32>
    %c0_13 = arith.constant 0 : index
    %c0_14 = arith.constant 0 : index
    %28 = vector.load %arg6[%c0_13, %c0_14] : memref<32x128xbf16, #tpu.memory_space<vmem>>, vector<32x128xbf16>
    %29 = vector.extract_strided_slice %13 {offsets = [0, 1], sizes = [32, 127], strides = [1, 1]} : vector<32x128xf32> to vector<32x127xf32>
    %30 = vector.extract_strided_slice %13 {offsets = [0, 0], sizes = [32, 1], strides = [1, 1]} : vector<32x128xf32> to vector<32x1xf32>
    %31 = tpu.concatenate %29, %30 in 1 : vector<32x127xf32>, vector<32x1xf32> -> vector<32x128xf32>
    %32 = arith.extf %28 : vector<32x128xbf16> to vector<32x128xf32>
    %33 = arith.mulf %32, %31 : vector<32x128xf32>
    %34 = arith.addf %27, %33 : vector<32x128xf32>
    %35 = arith.negf %34 : vector<32x128xf32>
    %36 = math.exp %35 : vector<32x128xf32>
    %cst_15 = arith.constant 1.000000e+00 : f32
    %37 = vector.broadcast %cst_15 : f32 to vector<32x128xf32>
    %38 = arith.addf %37, %36 : vector<32x128xf32>
    %39 = arith.divf %37, %38 : vector<32x128xf32>
    %40 = arith.mulf %34, %39 : vector<32x128xf32>
    %cst_16 = arith.constant dense<0.000000e+00> : vector<32xf32>
    %41 = vector.multi_reduction <add>, %40, %cst_16 [1] : vector<32x128xf32> to vector<32xf32>
    %42 = vector.shape_cast %41 : vector<32xf32> to vector<32x1xf32>
    %cst_17 = arith.constant 1.280000e+02 : f32
    %43 = vector.broadcast %cst_17 : f32 to vector<32x1xf32>
    %44 = arith.divf %42, %43 : vector<32x1xf32>
    %c0_18 = arith.constant 0 : index
    %c0_19 = arith.constant 0 : index
    %45 = vector.load %arg8[%c0_18, %c0_19] : memref<8x32xbf16, #tpu.memory_space<vmem>>, vector<8x32xbf16>
    %46 = arith.truncf %44 : vector<32x1xf32> to vector<32x1xbf16>
    %cst_20 = arith.constant dense<0.000000e+00> : vector<8x1xf32>
    %47 = tpu.matmul %45, %46, %cst_20 {dimension_numbers = #tpu.dot_dimension_numbers<[1], [0], [0], [1], [0, 0, 1, 1], [], []>} : vector<8x32xbf16>, vector<32x1xbf16>, vector<8x1xf32> -> vector<8x1xf32>
    %c0_21 = arith.constant 0 : index
    %c0_22 = arith.constant 0 : index
    %48 = vector.load %arg9[%c0_21, %c0_22] : memref<8x1xf32, #tpu.memory_space<vmem>>, vector<8x1xf32>
    %49 = arith.addf %47, %48 : vector<8x1xf32>
    %50 = arith.negf %49 : vector<8x1xf32>
    %51 = math.exp %50 : vector<8x1xf32>
    %cst_23 = arith.constant 1.000000e+00 : f32
    %52 = vector.broadcast %cst_23 : f32 to vector<8x1xf32>
    %53 = arith.addf %52, %51 : vector<8x1xf32>
    %54 = arith.divf %52, %53 : vector<8x1xf32>
    %55 = arith.mulf %49, %54 : vector<8x1xf32>
    %c0_24 = arith.constant 0 : index
    %c0_25 = arith.constant 0 : index
    %56 = vector.load %arg10[%c0_24, %c0_25] : memref<32x8xbf16, #tpu.memory_space<vmem>>, vector<32x8xbf16>
    %57 = arith.truncf %55 : vector<8x1xf32> to vector<8x1xbf16>
    %cst_26 = arith.constant dense<0.000000e+00> : vector<32x1xf32>
    %58 = tpu.matmul %56, %57, %cst_26 {dimension_numbers = #tpu.dot_dimension_numbers<[1], [0], [0], [1], [0, 0, 1, 1], [], []>} : vector<32x8xbf16>, vector<8x1xbf16>, vector<32x1xf32> -> vector<32x1xf32>
    %c0_27 = arith.constant 0 : index
    %c0_28 = arith.constant 0 : index
    %59 = vector.load %arg11[%c0_27, %c0_28] : memref<32x1xf32, #tpu.memory_space<vmem>>, vector<32x1xf32>
    %60 = arith.addf %58, %59 : vector<32x1xf32>
    %61 = arith.negf %60 : vector<32x1xf32>
    %62 = math.exp %61 : vector<32x1xf32>
    %cst_29 = arith.constant 1.000000e+00 : f32
    %63 = vector.broadcast %cst_29 : f32 to vector<32x1xf32>
    %64 = arith.addf %63, %62 : vector<32x1xf32>
    %65 = arith.divf %63, %64 : vector<32x1xf32>
    %66 = vector.broadcast %65 : vector<32x1xf32> to vector<32x128xf32>
    %67 = arith.mulf %40, %66 : vector<32x128xf32>
    %c0_30 = arith.constant 0 : index
    %c0_31 = arith.constant 0 : index
    %68 = vector.load %arg12[%c0_30, %c0_31] : memref<8x32xbf16, #tpu.memory_space<vmem>>, vector<8x32xbf16>
    %69 = arith.truncf %67 : vector<32x128xf32> to vector<32x128xbf16>
    %cst_32 = arith.constant dense<0.000000e+00> : vector<8x128xf32>
    %70 = tpu.matmul %68, %69, %cst_32 {dimension_numbers = #tpu.dot_dimension_numbers<[1], [0], [0], [1], [0, 0, 1, 1], [], []>} : vector<8x32xbf16>, vector<32x128xbf16>, vector<8x128xf32> -> vector<8x128xf32>
    %c0_33 = arith.constant 0 : index
    %c0_34 = arith.constant 0 : index
    %71 = vector.load %arg13[%c0_33, %c0_34] : memref<8x1xf32, #tpu.memory_space<vmem>>, vector<8x1xf32>
    %72 = vector.broadcast %71 : vector<8x1xf32> to vector<8x128xf32>
    %73 = arith.addf %70, %72 : vector<8x128xf32>
    %74 = arith.addf %73, %1 : vector<8x128xf32>
    %c0_35 = arith.constant 0 : index
    %c0_36 = arith.constant 0 : index
    %c0_37 = arith.constant 0 : index
    %75 = vector.load %arg14[%c0_35, %c0_36, %c0_37] : memref<1x8x128xf32, #tpu.memory_space<vmem>>, vector<1x8x128xf32>
    %76 = vector.shape_cast %75 : vector<1x8x128xf32> to vector<8x128xf32>
    %77 = vector.shape_cast %74 : vector<8x128xf32> to vector<1x8x128xf32>
    tpu.vector_store %arg14[%c0_35, %c0_36, %c0_37], %77 {strides = array<i32>} : memref<1x8x128xf32, #tpu.memory_space<vmem>>, vector<1x8x128xf32>,
    return
  }
  func.func @transform_0(%arg0: i32) -> (i32, i32, i32) {
    %c0_i32 = arith.constant 0 : i32
    %c0_i32_0 = arith.constant 0 : i32
    %c0_i32_1 = arith.constant 0 : i32
    return %arg0, %c0_i32, %c0_i32_0 : i32, i32, i32
  }
  func.func @transform_1(%arg0: i32) -> (i32, i32) {
    %c0_i32 = arith.constant 0 : i32
    %c0_i32_0 = arith.constant 0 : i32
    %c0_i32_1 = arith.constant 0 : i32
    return %c0_i32, %c0_i32_0 : i32, i32
  }
  func.func @transform_2(%arg0: i32) -> (i32, i32) {
    %c0_i32 = arith.constant 0 : i32
    %c0_i32_0 = arith.constant 0 : i32
    %c0_i32_1 = arith.constant 0 : i32
    return %c0_i32, %c0_i32_0 : i32, i32
  }
  func.func @transform_3(%arg0: i32) -> (i32, i32) {
    %c0_i32 = arith.constant 0 : i32
    %c0_i32_0 = arith.constant 0 : i32
    %c0_i32_1 = arith.constant 0 : i32
    return %c0_i32, %c0_i32_0 : i32, i32
  }
  func.func @transform_4(%arg0: i32) -> (i32, i32) {
    %c0_i32 = arith.constant 0 : i32
    %c0_i32_0 = arith.constant 0 : i32
    %c0_i32_1 = arith.constant 0 : i32
    return %c0_i32, %c0_i32_0 : i32, i32
  }
  func.func @transform_5(%arg0: i32) -> (i32, i32) {
    %c0_i32 = arith.constant 0 : i32
    %c0_i32_0 = arith.constant 0 : i32
    %c0_i32_1 = arith.constant 0 : i32
    return %c0_i32, %c0_i32_0 : i32, i32
  }
  func.func @transform_6(%arg0: i32) -> (i32, i32) {
    %c0_i32 = arith.constant 0 : i32
    %c0_i32_0 = arith.constant 0 : i32
    %c0_i32_1 = arith.constant 0 : i32
    return %c0_i32, %c0_i32_0 : i32, i32
  }
  func.func @transform_7(%arg0: i32) -> (i32, i32) {
    %c0_i32 = arith.constant 0 : i32
    %c0_i32_0 = arith.constant 0 : i32
    %c0_i32_1 = arith.constant 0 : i32
    return %c0_i32, %c0_i32_0 : i32, i32
  }
  func.func @transform_8(%arg0: i32) -> (i32, i32) {
    %c0_i32 = arith.constant 0 : i32
    %c0_i32_0 = arith.constant 0 : i32
    %c0_i32_1 = arith.constant 0 : i32
    return %c0_i32, %c0_i32_0 : i32, i32
  }
  func.func @transform_9(%arg0: i32) -> (i32, i32) {
    %c0_i32 = arith.constant 0 : i32
    %c0_i32_0 = arith.constant 0 : i32
    %c0_i32_1 = arith.constant 0 : i32
    return %c0_i32, %c0_i32_0 : i32, i32
  }
  func.func @transform_10(%arg0: i32) -> (i32, i32) {
    %c0_i32 = arith.constant 0 : i32
    %c0_i32_0 = arith.constant 0 : i32
    %c0_i32_1 = arith.constant 0 : i32
    return %c0_i32, %c0_i32_0 : i32, i32
  }
  func.func @transform_11(%arg0: i32) -> (i32, i32) {
    %c0_i32 = arith.constant 0 : i32
    %c0_i32_0 = arith.constant 0 : i32
    %c0_i32_1 = arith.constant 0 : i32
    return %c0_i32, %c0_i32_0 : i32, i32
  }
  func.func @transform_12(%arg0: i32) -> (i32, i32) {
    %c0_i32 = arith.constant 0 : i32
    %c0_i32_0 = arith.constant 0 : i32
    %c0_i32_1 = arith.constant 0 : i32
    return %c0_i32, %c0_i32_0 : i32, i32
  }
  func.func @transform_13(%arg0: i32) -> (i32, i32, i32) {
    %c0_i32 = arith.constant 0 : i32
    %c0_i32_0 = arith.constant 0 : i32
    %c0_i32_1 = arith.constant 0 : i32
    return %arg0, %c0_i32, %c0_i32_0 : i32, i32, i32
  }
}

</mosaic_0001>

<bundles_post_ra>
// kernel: tpu_custom_call.1
= control target key start
LH: loop header
LB: loop body
LE: loop exit
PB: predicated region body
PF: predicated region fallthrough
CT: control target
= control target key end

     0   :  { %18 = vsyncpa [#allocation3], 0  ;;  %s1601_s0 = inlined_call_operand.vmem [shape: f32[2,8,128], index: 0, kind: input, shape index: {}]   ;;  %s1602_s1 = inlined_call_operand.vmem [shape: bf16[32,8], index: 1, kind: input, shape index: {}]   ;;  %s1603_s2 = inlined_call_operand.vmem [shape: f32[32,1], index: 2, kind: input, shape index: {}]   ;;  %s1604_s3 = inlined_call_operand.vmem [shape: bf16[32,128], index: 3, kind: input, shape index: {}]   ;;  %s1605_s4 = inlined_call_operand.vmem [shape: bf16[32,1], index: 4, kind: input, shape index: {}]   ;;  %s1606_s5 = inlined_call_operand.vmem [shape: bf16[32,128], index: 5, kind: input, shape index: {}]   ;;  %s1607_s6 = inlined_call_operand.vmem [shape: f32[32,1], index: 6, kind: input, shape index: {}]   ;;  %s1608_s7 = inlined_call_operand.vmem [shape: bf16[8,32], index: 7, kind: input, shape index: {}]   ;;  %s1609_s8 = inlined_call_operand.vmem [shape: f32[8,1], index: 8, kind: input, shape index: {}]   ;;  %s1610_s9 = inlined_call_operand.vmem [shape: bf16[32,8], index: 9, kind: input, shape index: {}]   ;;  %s1611_s10 = inlined_call_operand.vmem [shape: f32[32,1], index: 10, kind: input, shape index: {}]   ;;  %s1612_s11 = inlined_call_operand.vmem [shape: bf16[8,32], index: 11, kind: input, shape index: {}]   ;;  %s1613_s12 = inlined_call_operand.vmem [shape: f32[8,1], index: 12, kind: input, shape index: {}]   ;;  %s1614_s13 = inlined_call_operand.hbm [shape: f32[2,8,128], index: 13, kind: output, shape index: {}]  }
   0x1   :  { %20 = vsyncpa [#allocation3 + $0x1], 0  ;;  %s1385_s25 = smov 0   ;;  %s1387_s26 = smov 0  }
   0x2   :  { %s1389_s27 = smov 0   ;;  %s1391_s28 = smov 0  }
   0x3 LB: > { %1618 = sst [smem:[#allocation5_spill]] %s1303_s27  ;;  %s1406_s29 = sadd.s32 4294967295, %s1307_s28   ;;  %s1307_s28 = sphi %s1391_s28, %s1623_s28   ;;  %s1303_s27 = sphi %s1389_s27, %s1625_s27   ;;  %s1299_s26 = sphi %s1387_s26, %s1627_s26   ;;  %s1295_s25 = sphi %s1385_s25, %s1626_s25  }
   0x4   : > { %s1033_s30 = sadd.s32 4294967294, %s1307_s28   ;;  %s1410_s14 = sadd.s32 1, %s1307_s28  }
   0x5   : > { %1619 = sst [smem:[#allocation6_spill]] %s1410_s14  ;;  %s311_s15 = sadd.s32 1, %s1303_s27 }
   0x6   : > { %s308_s16 = ssub.s32 %s1307_s28, %s1410_s14  ;;  %p321_p0 = scmp.ne.s32.totalorder %s1303_s27, %s1299_s26 }
   0x7   : > { %p309_p1 = scmp.eq.s32.totalorder %s308_s16, 0  ;;  %p322_p2 = scmp.eq.s32.totalorder %s1406_s29, 1 }
   0x8   : > { %p327_p3 = scmp.ne.s32.totalorder %s1299_s26, %s1295_s25  ;;  %p328_p4 = scmp.eq.s32.totalorder %s1033_s30, 1 }
   0x9   : > { %s1421_s17 = scalar_select %p309_p1, %s1303_s27, %s311_s15  }
   0xa   : > { %p1423_p5 = por %p322_p2, %p321_p0  ;;  %p1427_p6 = por %p328_p4, %p327_p3 }
   0xb   : > { %1620 = sst [smem:[#allocation7_spill]] %s1421_s17  ;;  %p1036_p7 = scmp.ge.s32.totalorder %s1307_s28, 1 }
   0xc   : > { %p389_p8 = scmp.lt.s32.totalorder %s1307_s28, 3 }
   0xe   : > { %p390_p9 = pnand %p1036_p7, %p389_p8 }
   0xf   : > { %p432_p10 = scmp.lt.s32.totalorder (!%p390_p9), %s1406_s29, 1  ;;  %s1310_s16 = smov (!%p390_p9), 1  }
  0x10   : > { %393 = sbr.rel (%p390_p9) target bundleno = 1387 (0x56b), region = 72  ;;  %s1311_s27 = smov (!%p390_p9), 127  }
  0x11   : > { %s429_s30 = sand.u32 (!%p390_p9), 1, %s1299_s26   ;;  %s1063_s17 = sshll.u32 (!%p390_p9), %s1406_s29, 7 }
  0x12   : > { %s1037_s15 = sshll.u32 (!%p390_p9), %s429_s30, 3  ;;  %s1314_s23 = smov (!%p390_p9), [#allocation2]  }
  0x13   : > { %s1251_s24 = sshll.u32 (!%p390_p9), %s1314_s23, 4  ;;  %s1252_s24 = int_to_ptr.vmem [resolvable:$false] %s1251_s24 }
  0x15   : > { %v1191_v0 = vld [vmem:[%s1602_s1] sm:$0xff]   ;;  %vm477_vm0 = vcmask 64512   ;;  %s433_s22 = scalar_select %p432_p10, %s1406_s29, 1  ;;  %v445_v1 = vld [vmem:[%s1603_s2 + $0x10] sm:$0xff]  ;;  %v1309_v2 = vmov 0   ;;  %v1090_v3 = vld [vmem:[%s1605_s4 + $0x8] sm:$0xff]  }
  0x16   : > { %1107 = vmatprep.mubr.msk.bf16.mxu0 %vm477_vm0, %v1191_v0  ;;  %1179 = vset.pattern.permute.xlu0 %v1309_v2  ;;  %v443_v4 = vld [vmem:[%s1603_s2] sm:$0xff]  ;;  %v446_v5 = vld [vmem:[%s1603_s2 + $0x18] sm:$0xff]  ;;  %v1072_v6 = vunpack.c.l.bf16 %v1090_v3  ;;  %v1073_v7 = vunpack.c.h.bf16 %v1090_v3  ;;  %v444_v8 = vld [vmem:[%s1603_s2 + $0x8] sm:$0xff]  ;;  %vm484_vm1 = vcmask 1043456   ;;  %vm1313_vm2 = vmmov 0   ;;  %s961_s29 = scalar_lea.sflag [#allocation3], %s429_s30 }
  0x17   : > { %s1038_s20 = sshll.u32 %s433_s22, 3  ;;  %459 = vperm.xlu0 %1179, %v445_v1   ;;  %1180 = vset.pattern.permute.xlu1 %v1309_v2  ;;  %v1067_v9 = vld [vmem:[%s1605_s4] sm:$0xff]   ;;  %v1192_v14 = vld [vmem:[%s1602_s1 + $0x8] sm:$0xff]   ;;  %v599_v17 = vld [vmem:[%s1607_s6 + $0x10] sm:$0xff]  ;;  %vm730_vm3 = vcmask 261120  }
  0x18   : > { %s435_s14 = scalar_lea.vmem %s1601_s0, %s1038_s20  ;;  %449 = vperm.xlu1 %1180, %v443_v4   ;;  %v1181_v12 = vpack.i.bf16 %v1073_v7, %v1072_v6  ;;  %v1068_v15 = vunpack.c.l.bf16 %v1067_v9  ;;  %v1069_v16 = vunpack.c.h.bf16 %v1067_v9  ;;  %v600_v18 = vld [vmem:[%s1607_s6 + $0x18] sm:$0xff]  ;;  %v597_v20 = vld [vmem:[%s1607_s6] sm:$0xff]  ;;  %v598_v21 = vld [vmem:[%s1607_s6 + $0x8] sm:$0xff]  ;;  %s1560_s20 = scalar_lea.hbm %s1614_s13, %s1063_s17 }
  0x19   : > { %v1460_v10 = vld [vmem:[%s435_s14] sm:$0xff]  ;;  %v1091_v58 = vld [vmem:[%s1604_s3 + $0x8] sm:$0xff]  }
  0x1a   : > { %v442_v11 = vpack.c.bf16 %v1460_v10, %v1460_v10  ;;  %v1186_v19 = vpack.i.bf16 %v1069_v16, %v1068_v15  ;;  %v1080_v61 = vunpack.c.l.bf16 %v1091_v58  ;;  %v1092_v62 = vld [vmem:[%s1606_s5 + $0x8] sm:$0xff]   ;;  %v1075_v6 = vld [vmem:[%s1604_s3] sm:$0xff]  }
  0x1b   : > { %464 = vperm.xlu0 %1179, %v446_v5   ;;  %v1088_v4 = vunpack.c.l.bf16 %v1092_v62  ;;  %v1081_v5 = vunpack.c.h.bf16 %v1091_v58 }
  0x1c   : > { %1133 = vmatprep.subr.msk.bf16.mxu0 %vm484_vm1, %v442_v11  ;;  %v486_v13 = vsel %vm484_vm1, %v442_v11, 0  ;;  %454 = vperm.xlu1 %1180, %v444_v8  }
  0x1d   : > { %1106 = vmatpush3.bf16.msra.mxu0 %v486_v13  ;;  %v1089_v13 = vunpack.c.h.bf16 %v1092_v62 }
  0x1f   : > { %1182 = vperm.xlu0 %1179, %v1181_v12  }
  0x20   : > { %1108 = vmatmul.mubr.msk.bf16.vlgmr.msra.gmra.mxu0 %vm477_vm0, %v1192_v14  ;;  %613 = vperm.xlu1 %1180, %v599_v17   ;;  %v1076_v17 = vunpack.c.l.bf16 %v1075_v6 }
  0x23   : > { %618 = vperm.xlu0 %1179, %v600_v18   ;;  %v1083_v18 = vld [vmem:[%s1606_s5] sm:$0xff]  }
  0x24   : > { %1187 = vperm.xlu1 %1180, %v1186_v19  }
  0x27   : > { %603 = vperm.xlu0 %1179, %v597_v20  }
  0x28   : > { %608 = vperm.xlu1 %1180, %v598_v21  }
  0x92   : > { %v460_v22 = vpop.permute.xlu0 %459 }
  0x93   : > { %v450_v23 = vpop.permute.xlu1 %449 }
  0x96   : > { %v465_v29 = vpop.permute.xlu0 %464 }
  0x97   : > { %v455_v33 = vpop.permute.xlu1 %454 }
  0x9a   : > { %v1183_v54 = vpop.permute.xlu0 %1182 }
  0x9b   : > { %v614_v55 = vpop.permute.xlu1 %613  ;;  %v1184_v60 = vunpack.i.l.bf16 %v1183_v54  ;;  %v1185_v2 = vunpack.i.h.bf16 %v1183_v54 }
  0x9e   : > { %v619_v56 = vpop.permute.xlu0 %618 }
  0x9f   : > { %v1188_v57 = vpop.permute.xlu1 %1187 }
  0xa0   : > { %v1189_v9 = vunpack.i.l.bf16 %v1188_v57 }
  0xa2   : > { %v604_v59 = vpop.permute.xlu0 %603 }
  0xa3   : > { %v609_v0 = vpop.permute.xlu1 %608 }
  0xe0   : > { %v1109_v24 = vpop.f32.mrf.mxu0 }
  0xe1   : > { %v531_v25 = vadd.f32 %v1109_v24, %v460_v22  ;;  %v1190_v22 = vunpack.i.h.bf16 %v1188_v57 }
  0xe2   : > { %v522_v26 = vpop.f32.mrf.mxu0 }
  0xe3   : > { %v1045_v27 = vmul.f32 -1.442695, %v531_v25  ;;  %v523_v28 = vadd.f32 %v522_v26, %v450_v23  ;;  %v1084_v26 = vunpack.c.l.bf16 %v1083_v18 }
  0xe4   : > { %v1110_v30 = vpop.f32.mrf.mxu0 }
  0xe5   : > { %1195 = vpow2.f32 %v1045_v27  ;;  %v1043_v31 = vmul.f32 -1.442695, %v523_v28  ;;  %v534_v32 = vadd.f32 %v1110_v30, %v465_v29 }
  0xe6   : > { %v525_v34 = vpop.f32.mrf.mxu0 }
  0xe7   : > { %1197 = vpow2.f32 %v1043_v31  ;;  %v1046_v35 = vmul.f32 -1.442695, %v534_v32  ;;  %v526_v36 = vadd.f32 %v525_v34, %v455_v33 }
  0xe9   : > { %1199 = vpow2.f32 %v1046_v35  ;;  %v1044_v37 = vmul.f32 -1.442695, %v526_v36 }
  0xeb   : > { %1201 = vpow2.f32 %v1044_v37 }
  0xf2   : > { %v1196_v38 = vpop.eup %1195 }
  0xf3   : > { %v551_v39 = vadd.f32 1.0, %v1196_v38 }
  0xf4   : > { %v1198_v40 = vpop.eup %1197 }
  0xf5   : > { %1203 = vrcp.f32 %v551_v39  ;;  %v549_v42 = vadd.f32 1.0, %v1198_v40 }
  0xf6   : > { %v1200_v41 = vpop.eup %1199 }
  0xf7   : > { %v552_v43 = vadd.f32 1.0, %v1200_v41 }
  0xf8   : > { %v1202_v44 = vpop.eup %1201 }
  0xf9   : > { %1205 = vrcp.f32 %v552_v43  ;;  %v550_v45 = vadd.f32 1.0, %v1202_v44 }
  0xfa   : > { %1207 = vrcp.f32 %v549_v42 }
  0xfb   : > { %1209 = vrcp.f32 %v550_v45 }
 0x102   : > { %v1204_v46 = vpop.eup %1203 }
 0x103   : > { %v563_v47 = vmul.f32 %v1204_v46, %v531_v25  ;;  %v1077_v25 = vunpack.c.h.bf16 %v1075_v6 }
 0x105   : > { %637 = vrot.lane.b32.xlu0 %v563_v47, %s1310_s16  ;;  %v595_v63 = vmul.f32 %v1184_v60, %v563_v47 }
 0x106   : > { %v1206_v48 = vpop.eup %1205 }
 0x107   : > { %v564_v49 = vmul.f32 %v1206_v48, %v534_v32  ;;  %v1208_v50 = vpop.eup %1207  ;;  %v623_v7 = vadd.f32 %v614_v55, %v595_v63 }
 0x108   : > { %v561_v51 = vmul.f32 %v1208_v50, %v523_v28  ;;  %v1210_v52 = vpop.eup %1209 }
 0x109   : > { %665 = vrot.lane.b32.xlu0 %v563_v47, %s1311_s27  ;;  %639 = vrot.lane.b32.xlu1 %v564_v49, %s1310_s16  ;;  %v562_v53 = vmul.f32 %v1210_v52, %v526_v36  ;;  %v596_v8 = vmul.f32 %v1185_v2, %v564_v49  ;;  %v1085_v36 = vunpack.c.h.bf16 %v1083_v18 }
 0x10a   : > { %v593_v19 = vmul.f32 %v1189_v9, %v561_v51 }
 0x10b   : > { %v624_v21 = vadd.f32 %v619_v56, %v596_v8  ;;  %v594_v31 = vmul.f32 %v1190_v22, %v562_v53 }
 0x10c   : > { %v621_v33 = vadd.f32 %v604_v59, %v593_v19 }
 0x10d   : > { %667 = vrot.lane.b32.xlu1 %v564_v49, %s1311_s27  ;;  %633 = vrot.lane.b32.xlu0 %v561_v51, %s1310_s16  ;;  %v622_v41 = vadd.f32 %v609_v0, %v594_v31  ;;  %v786_v31 = vld [vmem:[%s1611_s10] sm:$0xff] }
 0x111   : > { %635 = vrot.lane.b32.xlu1 %v562_v53, %s1310_s16  ;;  %661 = vrot.lane.b32.xlu0 %v561_v51, %s1311_s27  ;;  %s431_s16 = scalar_lea.vmem [#allocation2], %s1037_s15  ;;  %s1253_s15 = scalar_lea.vmem %s1252_s24, 256 }
 0x115   : > { %663 = vrot.lane.b32.xlu1 %v562_v53, %s1311_s27  ;;  %s974_s27 = sshll.u32 %s431_s16, 4  ;;  %s1562_s27 = int_to_ptr.vmem [resolvable:$true] %s974_s27 }
 0x116   : > { %s1247_s21 = scalar_lea.vmem %s1562_s27, 128  ;;  %p1254_p0 = scmp.lt.s32.totalorder %s1562_s27, %s1252_s24 }
 0x117   : > { %p1248_p11 = scmp.ne.s32.totalorder %s1562_s27, %s1247_s21  ;;  %p1255_p1 = scmp.lt.s32.totalorder %s1253_s15, %s1247_s21 }
 0x119   : > { %p1249_p12 = pnand %p1248_p11, %p1423_p5  ;;  %p1256_p2 = por %p1255_p1, %p1254_p0 }
 0x11b   : > { %p1250_p13 = pneg %p1249_p12 }
 0x11d   : > { %p1257_p3 = pnand %p1256_p2, %p1250_p13 }
 0x177   : > { %v638_v1 = vpop.permute.xlu0 %637 }
 0x178   : > { %v651_v3 = vmul.f32 %v1080_v61, %v638_v1  ;;  %v1312_v1 = vmov 0.0  }
 0x179   : > { %1111 = vmatprep.subr.bf16.mxu1 %v1312_v1  ;;  %1115 = vmatprep.mubr.msk.bf16.mxu1 %vm1313_vm2, %v1312_v1 }
 0x17a   : > { %v655_v14 = vadd.f32 %v651_v3, %v623_v7 }
 0x17b   : > { %v666_v11 = vpop.permute.xlu0 %665  ;;  %v640_v12 = vpop.permute.xlu1 %639 }
 0x17c   : > { %v679_v15 = vmul.f32 %v1088_v4, %v666_v11  ;;  %v652_v16 = vmul.f32 %v1081_v5, %v640_v12 }
 0x17e   : > { %v683_v20 = vadd.f32 %v679_v15, %v655_v14  ;;  %v656_v28 = vadd.f32 %v652_v16, %v624_v21  ;;  %v1193_v14 = vld [vmem:[%s1610_s9] sm:$0xff]  }
 0x17f   : > { %v668_v23 = vpop.permute.xlu1 %667  ;;  %v634_v24 = vpop.permute.xlu0 %633  ;;  %1121 = vmatprep.mubr.msk.bf16.mxu0 %vm477_vm0, %v1193_v14  ;;  %v729_v15 = vld [vmem:[%s1609_s8] sm:$0xff] }
 0x180   : > { %v1049_v27 = vmul.f32 -1.442695, %v683_v20  ;;  %v680_v29 = vmul.f32 %v1089_v13, %v668_v23  ;;  %v649_v30 = vmul.f32 %v1076_v17, %v634_v24  ;;  %v726_v13 = vld [vmem:[%s1608_s7] sm:$0xf] }
 0x182   : > { %1211 = vpow2.f32 %v1049_v27  ;;  %v684_v32 = vadd.f32 %v680_v29, %v656_v28  ;;  %v653_v38 = vadd.f32 %v649_v30, %v621_v33  ;;  %v1194_v28 = vld [vmem:[%s1610_s9 + $0x8] sm:$0xff]   ;;  %v788_v29 = vld [vmem:[%s1611_s10 + $0x10] sm:$0xff] }
 0x183   : > { %v636_v34 = vpop.permute.xlu1 %635  ;;  %v662_v35 = vpop.permute.xlu0 %661 }
 0x184   : > { %v1050_v37 = vmul.f32 -1.442695, %v684_v32  ;;  %v650_v39 = vmul.f32 %v1077_v25, %v636_v34  ;;  %v677_v40 = vmul.f32 %v1084_v26, %v662_v35  ;;  %v789_v34 = vld [vmem:[%s1611_s10 + $0x18] sm:$0xff] }
 0x186   : > { %1213 = vpow2.f32 %v1050_v37  ;;  %v681_v42 = vadd.f32 %v677_v40, %v653_v38  ;;  %v654_v44 = vadd.f32 %v650_v39, %v622_v41  ;;  %v787_v38 = vld [vmem:[%s1611_s10 + $0x8] sm:$0xff] }
 0x187   : > { %v664_v43 = vpop.permute.xlu1 %663 }
 0x188   : > { %v1047_v45 = vmul.f32 -1.442695, %v681_v42  ;;  %v678_v46 = vmul.f32 %v1085_v36, %v664_v43 }
 0x18a   : > { %1215 = vpow2.f32 %v1047_v45  ;;  %v682_v47 = vadd.f32 %v678_v46, %v654_v44 }
 0x18c   : > { %v1048_v48 = vmul.f32 -1.442695, %v682_v47 }
 0x18e   : > { %1217 = vpow2.f32 %v1048_v48 }
 0x18f   : > { %v1212_v49 = vpop.eup %1211 }
 0x190   : > { %v699_v50 = vadd.f32 1.0, %v1212_v49 }
 0x192   : > { %1219 = vrcp.f32 %v699_v50 }
 0x193   : > { %v1214_v51 = vpop.eup %1213 }
 0x194   : > { %v700_v52 = vadd.f32 1.0, %v1214_v51 }
 0x196   : > { %1221 = vrcp.f32 %v700_v52 }
 0x197   : > { %v1216_v53 = vpop.eup %1215 }
 0x198   : > { %v697_v54 = vadd.f32 1.0, %v1216_v53 }
 0x19a   : > { %1223 = vrcp.f32 %v697_v54 }
 0x19b   : > { %v1218_v55 = vpop.eup %1217 }
 0x19c   : > { %v698_v56 = vadd.f32 1.0, %v1218_v55 }
 0x19e   : > { %1225 = vrcp.f32 %v698_v56  ;;  %v909_v56 = vld [vmem:[%s1613_s12] sm:$0xff] }
 0x19f   : > { %v1220_v57 = vpop.eup %1219 }
 0x1a0   : > { %v1494_v58 = vmul.f32 %v1220_v57, %v683_v20 }
 0x1a2   : > { %717 = vadd.xlane.f32.xlu0 %v1494_v58 }
 0x1a3   : > { %v1222_v59 = vpop.eup %1221 }
 0x1a4   : > { %v1497_v60 = vmul.f32 %v1222_v59, %v684_v32 }
 0x1a6   : > { %719 = vadd.xlane.f32.xlu1 %v1497_v60 }
 0x1a7   : > { %v1224_v61 = vpop.eup %1223 }
 0x1a8   : > { %v1500_v62 = vmul.f32 %v1224_v61, %v681_v42 }
 0x1aa   : > { %713 = vadd.xlane.f32.xlu0 %v1500_v62 }
 0x1ab   : > { %v1226_v63 = vpop.eup %1225 }
 0x1ac   : > { %v1503_v0 = vmul.f32 %v1226_v63, %v682_v47 }
 0x1ae   : > { %715 = vadd.xlane.f32.xlu0 %v1503_v0 }
 0x22b   : > { %v718_v2 = vpop.xlane.xlu0 %717 }
 0x22c   : > { %v724_v4 = vmul.f32 0.0078125, %v718_v2 }
 0x22f   : > { %v720_v3 = vpop.xlane.xlu1 %719 }
 0x230   : > { %v725_v5 = vmul.f32 0.0078125, %v720_v3 }
 0x232   : > { %v728_v6 = vpack.c.bf16 %v725_v5, %v724_v4 }
 0x233   : > { %v714_v7 = vpop.xlane.xlu0 %713 }
 0x234   : > { %1112 = vmatpush3.bf16.msra.mxu1 %v728_v6  ;;  %v722_v9 = vmul.f32 0.0078125, %v714_v7 }
 0x235   : > { %1113 = vmatprep.subr.bf16.mxu1 %v1312_v1 }
 0x237   : > { %v716_v8 = vpop.xlane.xlu0 %715 }
 0x238   : > { %v723_v11 = vmul.f32 0.0078125, %v716_v8 }
 0x23a   : > { %v727_v12 = vpack.c.bf16 %v723_v11, %v722_v9  ;;  %v906_v9 = vld [vmem:[%s1612_s11] sm:$0xf] }
 0x23c   : > { %1114 = vmatpush3.bf16.msra.mxu1 %v727_v12 }
 0x23d   : > { %1125 = vmatprep.subr.bf16.mxu1 %v1312_v1 }
 0x23f   : > { %1116 = vmatmul.mubr.msk.bf16.vlgmr.msra.gmra.mxu1 %vm730_vm3, %v726_v13 }
 0x240   : > { %1129 = vmatprep.mubr.msk.bf16.mxu1 %vm1313_vm2, %v1312_v1 }
 0x2ff   : > { %v768_v16 = vpop.f32.mrf.mxu1 }
 0x300   : > { %v769_v17 = vadd.f32 %v768_v16, %v729_v15 }
 0x301   : > { %v1117_v18 = vpop.f32.mrf.mxu1 }
 0x302   : > { %v1052_v19 = vmul.f32 -1.442695, %v769_v17 }
 0x303   : > { %v771_v20 = vpop.f32.mrf.mxu1 }
 0x304   : > { %1227 = vpow2.f32 %v1052_v19 }
 0x305   : > { %v1118_v21 = vpop.f32.mrf.mxu1 }
 0x311   : > { %v1228_v22 = vpop.eup %1227 }
 0x312   : > { %v777_v23 = vadd.f32 1.0, %v1228_v22 }
 0x314   : > { %1229 = vrcp.f32 %v777_v23 }
 0x321   : > { %v1230_v24 = vpop.eup %1229 }
 0x322   : > { %v780_v25 = vmul.f32 %v1230_v24, %v769_v17 }
 0x324   : > { %v785_v26 = vpack.c.bf16 %v780_v25, %v780_v25 }
 0x326   : > { %1134 = vmatprep.subr.msk.bf16.mxu0 %vm484_vm1, %v785_v26  ;;  %v807_v27 = vsel %vm484_vm1, %v785_v26, 0 }
 0x327   : > { %1120 = vmatpush3.bf16.msra.mxu0 %v807_v27 }
 0x32a   : > { %1122 = vmatmul.mubr.msk.bf16.vlgmr.msra.gmra.mxu0 %vm477_vm0, %v1194_v28 }
 0x3ea   : > { %v1123_v30 = vpop.f32.mrf.mxu0 }
 0x3eb   : > { %v852_v32 = vadd.f32 %v1123_v30, %v788_v29 }
 0x3ec   : > { %v843_v33 = vpop.f32.mrf.mxu0 }
 0x3ed   : > { %v1059_v35 = vmul.f32 -1.442695, %v852_v32  ;;  %v844_v36 = vadd.f32 %v843_v33, %v786_v31 }
 0x3ee   : > { %v1124_v37 = vpop.f32.mrf.mxu0 }
 0x3ef   : > { %1231 = vpow2.f32 %v1059_v35  ;;  %v1057_v39 = vmul.f32 -1.442695, %v844_v36  ;;  %v855_v40 = vadd.f32 %v1124_v37, %v789_v34 }
 0x3f0   : > { %v846_v41 = vpop.f32.mrf.mxu0 }
 0x3f1   : > { %1233 = vpow2.f32 %v1057_v39  ;;  %v1060_v42 = vmul.f32 -1.442695, %v855_v40  ;;  %v847_v43 = vadd.f32 %v846_v41, %v787_v38 }
 0x3f3   : > { %1235 = vpow2.f32 %v1060_v42  ;;  %v1058_v44 = vmul.f32 -1.442695, %v847_v43 }
 0x3f5   : > { %1237 = vpow2.f32 %v1058_v44 }
 0x3fc   : > { %v1232_v45 = vpop.eup %1231 }
 0x3fd   : > { %v872_v46 = vadd.f32 1.0, %v1232_v45 }
 0x3fe   : > { %v1234_v47 = vpop.eup %1233 }
 0x3ff   : > { %1239 = vrcp.f32 %v872_v46  ;;  %v870_v48 = vadd.f32 1.0, %v1234_v47 }
 0x400   : > { %v1236_v49 = vpop.eup %1235 }
 0x401   : > { %v873_v50 = vadd.f32 1.0, %v1236_v49  ;;  %1241 = vrcp.f32 %v870_v48 }
 0x402   : > { %v1238_v51 = vpop.eup %1237 }
 0x403   : > { %1243 = vrcp.f32 %v873_v50  ;;  %v871_v52 = vadd.f32 1.0, %v1238_v51 }
 0x405   : > { %1245 = vrcp.f32 %v871_v52 }
 0x40c   : > { %v1240_v53 = vpop.eup %1239 }
 0x40d   : > { %894 = vperm.xlu1 %1180, %v1240_v53  }
 0x40e   : > { %v1242_v54 = vpop.eup %1241 }
 0x410   : > { %v1244_v55 = vpop.eup %1243 }
 0x411   : > { %899 = vperm.xlu0 %1179, %v1244_v55   ;;  %884 = vperm.xlu1 %1180, %v1242_v54  }
 0x412   : > { %v1246_v57 = vpop.eup %1245 }
 0x415   : > { %912 = vperm.xlu0 %1179, %v909_v56   ;;  %889 = vperm.xlu1 %1180, %v1246_v57  }
 0x488   : > { %v895_v59 = vpop.permute.xlu1 %894 }
 0x489   : > { %v904_v2 = vmul.f32 %v895_v59, %v1494_v58 }
 0x48c   : > { %v900_v61 = vpop.permute.xlu0 %899  ;;  %v885_v63 = vpop.permute.xlu1 %884 }
 0x48d   : > { %v905_v3 = vmul.f32 %v900_v61, %v1497_v60  ;;  %v902_v6 = vmul.f32 %v885_v63, %v1500_v62 }
 0x48f   : > { %v908_v4 = vpack.c.bf16 %v905_v3, %v904_v2 }
 0x490   : > { %v890_v5 = vpop.permute.xlu1 %889  ;;  %v913_v58 = vpop.permute.xlu0 %912 }
 0x491   : > { %v903_v7 = vmul.f32 %v890_v5, %v1503_v0  ;;  %1126 = vmatpush3.bf16.msra.mxu1 %v908_v4 }
 0x492   : > { %1127 = vmatprep.subr.bf16.mxu1 %v1312_v1 }
 0x493   : > { %v907_v8 = vpack.c.bf16 %v903_v7, %v902_v6 }
 0x495   : > { %1128 = vmatpush3.bf16.msra.mxu1 %v907_v8 }
 0x498   : > { %1130 = vmatmul.mubr.msk.bf16.vlgmr.msra.gmra.mxu1 %vm730_vm3, %v906_v9 }
 0x558   : > { %v952_v60 = vpop.f32.mrf.mxu1 }
 0x559   : > { %v953_v62 = vadd.f32 %v952_v60, %v913_v58 }
 0x55a   : > { %v1131_v0 = vpop.f32.mrf.mxu1 }
 0x55b   : > { %v958_v1 = vadd.f32 %v953_v62, %v1460_v10 }
 0x55c   : > { %v955_v11 = vpop.f32.mrf.mxu1 }
 0x55d   : > { %959 = vst [vmem:[%s431_s16] sm:$0xff] %v958_v1 }
 0x55e   : > { %v1132_v12 = vpop.f32.mrf.mxu1 }
 0x55f   : > { %1260 = shalt.err (!%p1257_p3)
}
 0x560   : > { %s1261_s17 = scalar_lea.hbm %s1560_s20, 128  ;;  %s1265_s22 = scalar_lea.hbm %s1614_s13, 256 }
 0x561   : > { %p1262_p4 = scmp.ne.s32.totalorder %s1560_s20, %s1261_s17  ;;  %p1266_p9 = scmp.lt.s32.totalorder %s1560_s20, %s1614_s13 }
 0x562   : > { %p1267_p10 = scmp.lt.s32.totalorder %s1265_s22, %s1261_s17 }
 0x563   : > { %p1263_p7 = pnand %p1262_p4, %p1423_p5 }
 0x564   : > { %p1268_p11 = por %p1267_p10, %p1266_p9 }
 0x565   : > { %p1264_p8 = pneg %p1263_p7 }
 0x567   : > { %p1269_p12 = pnand %p1268_p11, %p1264_p8 }
 0x569   : > { %1272 = shalt.err (!%p1269_p12)
}
 0x56a   : > { %1135 = dma.vmem_to_hbm [thread:$0]  (%p1423_p5), %s1562_s27, 128, %s1560_s20, %s961_s29  }
 0x56b PF: > { %p1141_p13 = scmp.ge.s32.totalorder %s1307_s28, 2  ;;  %s986_s21 = sand.u32 1, %s1295_s25  }
 0x56c   : > { %s987_s24 = scalar_lea.sflag [#allocation3], %s986_s21 }
 0x56d   : > { %p1138_p0 = pnand %p1141_p13, %p1427_p6 }
 0x56f   : > { %p1139_p1 = pneg %p1138_p0 }
 0x571   : > { %1290 = dma.done.wait (%p1139_p1), %s987_s24, 128  }
 0x572   : > { %1292 = vsyncadd (%p1139_p1), %s987_s24, 4294967168  ;;  %s1623_s28 = sld [smem:[#allocation6_spill]]  ;;  %s1626_s25 = smov %s1299_s26 }
 0x573   : > { %s1624_s15 = sld [smem:[#allocation5_spill]] }
 0x574   : > { %s1625_s27 = sld [smem:[#allocation7_spill]] }
 0x578   : > { %p23_p2 = scmp.ge.s32.totalorder %s1623_s28, 4  }
 0x579   : > { %s1627_s26 = smov %s1624_s15 }
 0x57a   :  { %25 = sbr.rel (!%p23_p2) target bundleno = 3 (0x3), region = 107 }
 0x57f   :  { %992 = vsyncpa [#allocation3], 1 }
 0x580   :  { %994 = vsyncpa [#allocation3 + $0x1], 1 }

</bundles_post_ra>
